<compile_context>
chip_gen: v5e
topology: v5e:2x2
jax: 0.10.0
libtpu: 0.0.40
codegen_flags: <defaults>
</compile_context>

<pallas_src>
import jax
import jax.numpy as jnp
from jax.experimental import pallas as pl
from jax.experimental.pallas import tpu as pltpu


def _round_up(x: int, m: int) -> int:
    return ((x + m - 1) // m) * m


def _matmul_kernel(x_ref, b_ref, y_ref, acc_ref):
    # Tiled matmul with f32 accumulator held in VMEM across the K grid axis.
    @pl.when(pl.program_id(2) == 0)
    def _():
        acc_ref[...] = jnp.zeros_like(acc_ref)

    acc_ref[...] += jnp.dot(
        x_ref[...], b_ref[...], preferred_element_type=jnp.float32
    )

    @pl.when(pl.program_id(2) == pl.num_programs(2) - 1)
    def _():
        y_ref[...] = acc_ref[...].astype(y_ref.dtype)


def _synthesis_matmul(x, b):
    """One fused synthesis matmul: x (M, K) bf16 @ b (K, N) bf16 -> (M, N) f32.

    M = S*BC (slices folded into rows), K = sum over blocks of 2*F_i*M_i
    (real+imag of every sliCQ block concatenated), N = sllen (lane-dense).
    """
    M, K = x.shape
    K2, N = b.shape
    assert K == K2

    # Tile sizes: rows padded to sublane multiples, lanes/contraction to 128.
    # At realistic sliCQ sizes this yields >=2 parallel M/N tiles so v7x's
    # second TensorCore gets work; at the tiny demo shapes it collapses to a
    # single grid step, which is still correct.
    tm = min(256, _round_up(M, 8))
    tn = min(512, _round_up(N, 128))
    tk = min(512, _round_up(K, 128))
    Mp, Np, Kp = _round_up(M, tm), _round_up(N, tn), _round_up(K, tk)

    xp = jnp.pad(x, ((0, Mp - M), (0, Kp - K)))
    bp = jnp.pad(b, ((0, Kp - K), (0, Np - N)))

    grid = (Mp // tm, Np // tn, Kp // tk)
    cost = pl.CostEstimate(
        flops=2 * Mp * Kp * Np,
        transcendentals=0,
        bytes_accessed=xp.size * 2 + bp.size * 2 + Mp * Np * 4,
    )

    out = pl.pallas_call(
        _matmul_kernel,
        out_shape=jax.ShapeDtypeStruct((Mp, Np), jnp.float32),
        grid=grid,
        in_specs=[
            pl.BlockSpec((tm, tk), lambda i, j, k: (i, k)),
            pl.BlockSpec((tk, tn), lambda i, j, k: (k, j)),
        ],
        out_specs=pl.BlockSpec((tm, tn), lambda i, j, k: (i, j)),
        scratch_shapes=[pltpu.VMEM((tm, tn), jnp.float32)],
        compiler_params=pltpu.CompilerParams(
            dimension_semantics=("parallel", "parallel", "arbitrary"),
            vmem_limit_bytes=32 * 1024 * 1024,
        ),
        cost_estimate=cost,
    )(xp, bp)
    return out[:M, :N]


class SyntheticSliCQ:
    """Deterministic stand-in for the inner NSGT object (`nsgt.nsgt`).

    backward(X_complex_list, length): fused linear per-slice synthesis
    (single Pallas matmul over all blocks and slices) followed by a vectorized
    50%-hop overlap-add over slices, truncated/padded to `length`.
    """
    # TODO(synk): the real sliCQ backward uses per-band iFFTs with the runtime
    # dual (synthesis) windows of the NSGT object; here that linear map is
    # replaced by deterministic dense synthesis atoms of the same shape.
    # TODO(synk): the sign convention y = Xr@Br + Xi@Bi (== Re(X * conj(B)))
    # should be validated against the real NSGT backward, which may use
    # Re(X * B) = Xr@Br - Xi@Bi.

    def __init__(self, fbins_mbins, sllen):
        assert sllen % 2 == 0, "50% overlap-add assumes even slice length"
        self.sllen = sllen
        self.hop = sllen // 2
        self.fbins_mbins = list(fbins_mbins)

        rows = []
        for (F, M) in self.fbins_mbins:
            K = F * M
            t = jnp.arange(sllen, dtype=jnp.float32)
            f = jnp.arange(F, dtype=jnp.float32)
            m = jnp.arange(M, dtype=jnp.float32)
            # deterministic modulated-window synthesis atoms, shape (F, M, L)
            phase = (2.0 * jnp.pi / sllen) * (f[:, None, None] + 1.0) * (
                t[None, None, :] - m[None, :, None] * (sllen / M))
            win = 0.5 - 0.5 * jnp.cos(2.0 * jnp.pi * (t + 0.5) / sllen)
            br = (jnp.cos(phase) * win[None, None, :]).reshape(K, sllen) / K
            bi = (jnp.sin(phase) * win[None, None, :]).reshape(K, sllen) / K
            rows.append(br)
            rows.append(bi)
        # Combined synthesis basis: (Ktot, L) with Ktot = sum_i 2*F_i*M_i.
        # Stored in bf16; the matmul accumulates in f32.
        self.basis = jnp.concatenate(rows, axis=0).astype(jnp.bfloat16)

    def backward(self, X_complex, length):
        # X_complex: list of (Xr, Xi) pairs, each shaped (S, BC, F_i, M_i).
        parts = []
        S = BC = None
        for (xr, xi) in X_complex:
            s_i, bc_i, F, M = xr.shape
            if S is None:
                S, BC = s_i, bc_i
            else:
                assert (s_i, bc_i) == (S, BC), "all blocks must share (S, BC)"
            parts.append(xr.reshape(S, BC, F * M))
            parts.append(xi.reshape(S, BC, F * M))
        x_all = jnp.concatenate(parts, axis=-1)          # (S, BC, Ktot)
        ktot = x_all.shape[-1]
        assert ktot == self.basis.shape[0]

        # Fold slices into the matmul row dimension -> one big MXU matmul.
        x2d = x_all.reshape(S * BC, ktot).astype(jnp.bfloat16)
        y2d = _synthesis_matmul(x2d, self.basis)          # (S*BC, L) f32
        y_sl = y2d.reshape(S, BC, self.sllen)

        # Vectorized 50%-hop overlap-add:
        #   slice s contributes its first half at offset s*hop and its second
        #   half at offset s*hop + hop; each group of halves is contiguous.
        hop = self.hop
        first = jnp.moveaxis(y_sl[:, :, :hop], 0, 1).reshape(BC, S * hop)
        second = jnp.moveaxis(y_sl[:, :, hop:], 0, 1).reshape(BC, S * hop)
        y_total = (jnp.pad(first, ((0, 0), (0, hop)))
                   + jnp.pad(second, ((0, 0), (hop, 0))))  # (BC, hop*(S+1))
        total = y_total.shape[1]
        if length <= total:
            return y_total[:, :length]
        return jnp.pad(y_total, ((0, 0), (0, length - total)))


class SliCQWrapper:
    """Mirrors the outer object so that INSGT_SL accesses `self.nsgt.nsgt.backward`."""

    def __init__(self, inner):
        self.nsgt = inner


class INSGT_SL:
    """JAX/Pallas port of xumx_slicq_22.transforms.INSGT_SL.forward."""

    def __init__(self, nsgt):
        self.nsgt = nsgt

    def __call__(self, X_list, length: int):
        X_complex = [None] * len(X_list)
        shape = None
        for i, X in enumerate(X_list):
            Xshape = X.ndim
            # torch.view_as_complex: split stacked (real, imag) last axis
            Xr, Xi = X[..., 0], X[..., 1]
            shape = Xr.shape  # complex-view shape
            if Xshape == 6:
                new = (shape[0] * shape[1],) + shape[2:]
            else:
                new = (shape[0] * shape[1] * shape[2],) + shape[3:]
            Xr = jnp.moveaxis(Xr.reshape(new), -2, 0)  # (S, BC, F, M)
            Xi = jnp.moveaxis(Xi.reshape(new), -2, 0)
            X_complex[i] = (Xr, Xi)
        y = self.nsgt.nsgt.backward(X_complex, length)  # (BC, length)
        return y.reshape(*shape[:-3], -1)


if __name__ == "__main__":
    key = jax.random.PRNGKey(0)
    B, C = 2, 2            # nb_samples, nb_channels
    S = 4                  # nb_slices
    L = 128                # slice length (sllen)
    blocks = [(8, 16), (16, 8)]  # ragged sliCQ blocks: (nb_f_bins, nb_m_bins)

    inner = SyntheticSliCQ(blocks, sllen=L)
    insgt = INSGT_SL(SliCQWrapper(inner))

    X_list = []
    for (F, M) in blocks:
        key, k = jax.random.split(key)
        X_list.append(jax.random.normal(k, (B, C, F, S, M, 2), dtype=jnp.float32))

    length = inner.hop * (S - 1) + L  # 320 samples
    y = insgt(X_list, length)
    jax.block_until_ready(y)
    assert y.shape == (B, C, length), y.shape
    assert y.dtype == jnp.float32
    print("KERNEL_OK")
</pallas_src>

<mosaic_0001>
module attributes {stable_mosaic.version = 11 : i64} {
  func.func @_matmul_kernel(%arg0: i32, %arg1: i32, %arg2: i32, %arg3: memref<16x512xbf16, #tpu.memory_space<vmem>>, %arg4: memref<512x128xbf16, #tpu.memory_space<vmem>>, %arg5: memref<16x128xf32, #tpu.memory_space<vmem>>, %arg6: memref<16x128xf32, #tpu.memory_space<vmem>>) attributes {dimension_semantics = [#tpu.dimension_semantics<parallel>, #tpu.dimension_semantics<parallel>, #tpu.dimension_semantics<arbitrary>], iteration_bounds = array<i64: 1, 1, 1>, scalar_prefetch = 0 : i64, scratch_operands = 1 : i64, tpu.core_type = #tpu.core_type<tc>, window_params = [{transform_indices = @transform_0, window_bounds = array<i64: 16, 512>}, {transform_indices = @transform_1, window_bounds = array<i64: 512, 128>}, {transform_indices = @transform_2, window_bounds = array<i64: 16, 128>}]} {
    %c0_i32 = arith.constant 0 : i32
    %0 = arith.cmpi eq, %arg2, %c0_i32 : i32
    %1 = arith.extui %0 : i1 to i32
    %c0_i32_0 = arith.constant 0 : i32
    %2 = arith.cmpi ne, %1, %c0_i32_0 : i32
    scf.if %2 {
      %cst_10 = arith.constant 0.000000e+00 : f32
      %12 = vector.broadcast %cst_10 : f32 to vector<16x128xf32>
      %c0_11 = arith.constant 0 : index
      %c0_12 = arith.constant 0 : index
      %13 = vector.load %arg6[%c0_11, %c0_12] : memref<16x128xf32, #tpu.memory_space<vmem>>, vector<16x128xf32>
      tpu.vector_store %arg6[%c0_11, %c0_12], %12 {strides = array<i32>} : memref<16x128xf32, #tpu.memory_space<vmem>>, vector<16x128xf32>,
    } else {
    }
    %c0 = arith.constant 0 : index
    %c0_1 = arith.constant 0 : index
    %3 = vector.load %arg6[%c0, %c0_1] : memref<16x128xf32, #tpu.memory_space<vmem>>, vector<16x128xf32>
    %c0_2 = arith.constant 0 : index
    %c0_3 = arith.constant 0 : index
    %4 = vector.load %arg3[%c0_2, %c0_3] : memref<16x512xbf16, #tpu.memory_space<vmem>>, vector<16x512xbf16>
    %c0_4 = arith.constant 0 : index
    %c0_5 = arith.constant 0 : index
    %5 = vector.load %arg4[%c0_4, %c0_5] : memref<512x128xbf16, #tpu.memory_space<vmem>>, vector<512x128xbf16>
    %cst = arith.constant dense<0.000000e+00> : vector<16x128xf32>
    %6 = tpu.matmul %4, %5, %cst {dimension_numbers = #tpu.dot_dimension_numbers<[1], [0], [0], [1], [0, 0, 1, 1], [], []>} : vector<16x512xbf16>, vector<512x128xbf16>, vector<16x128xf32> -> vector<16x128xf32>
    %7 = arith.addf %3, %6 : vector<16x128xf32>
    %c0_6 = arith.constant 0 : index
    %c0_7 = arith.constant 0 : index
    %8 = vector.load %arg6[%c0_6, %c0_7] : memref<16x128xf32, #tpu.memory_space<vmem>>, vector<16x128xf32>
    tpu.vector_store %arg6[%c0_6, %c0_7], %7 {strides = array<i32>} : memref<16x128xf32, #tpu.memory_space<vmem>>, vector<16x128xf32>,
    %c0_i32_8 = arith.constant 0 : i32
    %9 = arith.cmpi eq, %arg2, %c0_i32_8 : i32
    %10 = arith.extui %9 : i1 to i32
    %c0_i32_9 = arith.constant 0 : i32
    %11 = arith.cmpi ne, %10, %c0_i32_9 : i32
    scf.if %11 {
      %c0_10 = arith.constant 0 : index
      %c0_11 = arith.constant 0 : index
      %12 = vector.load %arg6[%c0_10, %c0_11] : memref<16x128xf32, #tpu.memory_space<vmem>>, vector<16x128xf32>
      %c0_12 = arith.constant 0 : index
      %c0_13 = arith.constant 0 : index
      %13 = vector.load %arg5[%c0_12, %c0_13] : memref<16x128xf32, #tpu.memory_space<vmem>>, vector<16x128xf32>
      tpu.vector_store %arg5[%c0_12, %c0_13], %12 {strides = array<i32>} : memref<16x128xf32, #tpu.memory_space<vmem>>, vector<16x128xf32>,
    } else {
    }
    return
  }
  func.func @transform_0(%arg0: i32, %arg1: i32, %arg2: i32) -> (i32, i32) {
    %c0_i32 = arith.constant 0 : i32
    return %arg0, %arg2 : i32, i32
  }
  func.func @transform_1(%arg0: i32, %arg1: i32, %arg2: i32) -> (i32, i32) {
    %c0_i32 = arith.constant 0 : i32
    return %arg2, %arg1 : i32, i32
  }
  func.func @transform_2(%arg0: i32, %arg1: i32, %arg2: i32) -> (i32, i32) {
    %c0_i32 = arith.constant 0 : i32
    return %arg0, %arg1 : i32, i32
  }
}

</mosaic_0001>

<bundles_post_ra>
// kernel: tpu_custom_call.1
= control target key start
LH: loop header
LB: loop body
LE: loop exit
PB: predicated region body
PF: predicated region fallthrough
CT: control target
= control target key end

     0   :  { %7 = vsyncpa [#allocation4], 0  ;;  %s719_s0 = inlined_call_operand.hbm [shape: bf16[16,512], index: 0, kind: input, shape index: {}]   ;;  %s720_s1 = inlined_call_operand.hbm [shape: bf16[512,128], index: 1, kind: input, shape index: {}]   ;;  %s721_s2 = inlined_call_operand.hbm [shape: f32[16,128], index: 2, kind: output, shape index: {}]  }
   0x1   :  { %8 = vsyncpa [#allocation7], 0 }
   0x2   :  { %9 = vsyncpa [#allocation5], 0  ;;  %s14_s11 = sshll.u32 %s719_s0, 4  ;;  %s686_s12 = smov [#allocation3]   ;;  %s15_s11 = int_to_ptr.hbm [resolvable:$true] %s14_s11 }
   0x3   :  { %s16_s13 = sshll.u32 %s686_s12, 4  ;;  %s27_s16 = sshll.u32 %s720_s1, 4  ;;  %s17_s13 = int_to_ptr.vmem [resolvable:$true] %s16_s13  ;;  %s28_s16 = int_to_ptr.hbm [resolvable:$true] %s27_s16 }
   0x4   :  { %s687_s17 = smov 256   ;;  %s688_s18 = smov 16  }
   0x5   :  { %22 = dma.hbm_to_vmem [thread:$0]  %s15_s11, 512, %s17_s13, [#allocation4], %s687_s17, %s687_s17, %s688_s18  }
   0x6   :  { %s689_s19 = smov [#allocation6]   ;;  %s690_s21 = smov 64  }
   0x7   :  { %s29_s20 = sshll.u32 %s689_s19, 4  ;;  %s691_s22 = smov 4   ;;  %s30_s20 = int_to_ptr.vmem [resolvable:$true] %s29_s20 }
   0x8   :  { %35 = dma.hbm_to_vmem [thread:$0]  %s28_s16, 4096, %s30_s20, [#allocation7], %s690_s21, %s690_s21, %s691_s22  }
   0x9   :  { %680 = dma.done.wait [#allocation4], 512  }
   0xa   :  { %681 = vsyncadd [#allocation4], 4294966784 }
   0xb   :  { %682 = dma.done.wait [#allocation7], 4096  }
   0xc   :  { %683 = vsyncadd [#allocation7], 4294963200  ;;  %v574_v0 = vld [vmem:[#allocation6 + $0x38] sm:$0xff]  ;;  %v573_v4 = vld [vmem:[#allocation6 + $0x30] sm:$0xff]  ;;  %s692_s0 = smov [#allocation8]   ;;  %s405_s25 = sshll.u32 %s721_s2, 4  ;;  %s406_s25 = int_to_ptr.hbm [resolvable:$true] %s405_s25 }
   0xd   :  { %v582_v1 = vld [vmem:[#allocation6 + $0x78] sm:$0xff]  ;;  %332 = vmatpush.bf16.msra.mxu0 %v574_v0  ;;  %v581_v5 = vld [vmem:[#allocation6 + $0x70] sm:$0xff]  ;;  %v572_v8 = vld [vmem:[#allocation6 + $0x28] sm:$0xff]  ;;  %s403_s1 = sshll.u32 %s692_s0, 4  ;;  %s693_s26 = smov 128   ;;  %s404_s1 = int_to_ptr.vmem [resolvable:$true] %s403_s1 }
   0xe   :  { %v590_v2 = vld [vmem:[#allocation6 + $0xb8] sm:$0xff]  ;;  %346 = vmatpush.bf16.msra.mxu1 %v582_v1  ;;  %v589_v6 = vld [vmem:[#allocation6 + $0xb0] sm:$0xff]  ;;  %v580_v9 = vld [vmem:[#allocation6 + $0x68] sm:$0xff]  ;;  %s694_s27 = smov 8  }
   0xf   :  { %v598_v3 = vld [vmem:[#allocation6 + $0xf8] sm:$0xff]  ;;  %360 = vmatpush.bf16.msra.mxu2 %v590_v2  ;;  %v597_v7 = vld [vmem:[#allocation6 + $0xf0] sm:$0xff]  ;;  %v588_v10 = vld [vmem:[#allocation6 + $0xa8] sm:$0xff] }
  0x10   :  { %374 = vmatpush.bf16.msra.mxu3 %v598_v3  ;;  %v596_v11 = vld [vmem:[#allocation6 + $0xe8] sm:$0xff]  ;;  %v571_v12 = vld [vmem:[#allocation6 + $0x20] sm:$0xff]  ;;  %v570_v16 = vld [vmem:[#allocation6 + $0x18] sm:$0xff] }
  0x11   :  { %333 = vmatpush.bf16.msra.mxu0 %v573_v4  ;;  %v579_v13 = vld [vmem:[#allocation6 + $0x60] sm:$0xff]  ;;  %v578_v17 = vld [vmem:[#allocation6 + $0x58] sm:$0xff]  ;;  %v569_v20 = vld [vmem:[#allocation6 + $0x10] sm:$0xff] }
  0x12   :  { %347 = vmatpush.bf16.msra.mxu1 %v581_v5  ;;  %v587_v14 = vld [vmem:[#allocation6 + $0xa0] sm:$0xff]  ;;  %v586_v18 = vld [vmem:[#allocation6 + $0x98] sm:$0xff]  ;;  %v577_v21 = vld [vmem:[#allocation6 + $0x50] sm:$0xff] }
  0x13   :  { %361 = vmatpush.bf16.msra.mxu2 %v589_v6  ;;  %v595_v15 = vld [vmem:[#allocation6 + $0xe0] sm:$0xff]  ;;  %v594_v19 = vld [vmem:[#allocation6 + $0xd8] sm:$0xff]  ;;  %v585_v22 = vld [vmem:[#allocation6 + $0x90] sm:$0xff] }
  0x14   :  { %375 = vmatpush.bf16.msra.mxu3 %v597_v7  ;;  %v593_v23 = vld [vmem:[#allocation6 + $0xd0] sm:$0xff]  ;;  %v568_v24 = vld [vmem:[#allocation6 + $0x8] sm:$0xff]  ;;  %v567_v28 = vld [vmem:[#allocation6] sm:$0xff] }
  0x15   :  { %334 = vmatpush.bf16.msra.mxu0 %v572_v8  ;;  %v576_v25 = vld [vmem:[#allocation6 + $0x48] sm:$0xff]  ;;  %v575_v29 = vld [vmem:[#allocation6 + $0x40] sm:$0xff]  ;;  %v565_v33 = vld [vmem:[#allocation3 + $0xc] sm:$0xf0] }
  0x16   :  { %348 = vmatpush.bf16.msra.mxu1 %v580_v9  ;;  %v584_v26 = vld [vmem:[#allocation6 + $0x88] sm:$0xff]  ;;  %v583_v30 = vld [vmem:[#allocation6 + $0x80] sm:$0xff]  ;;  %v423_v35 = vld [vmem:[#allocation3 + $0x10] sm:$0xf0] }
  0x17   :  { %362 = vmatpush.bf16.msra.mxu2 %v588_v10  ;;  %v592_v27 = vld [vmem:[#allocation6 + $0xc8] sm:$0xff]  ;;  %v591_v31 = vld [vmem:[#allocation6 + $0xc0] sm:$0xff]  ;;  %v566_v37 = vld [vmem:[#allocation3 + $0x14] sm:$0xf0] }
  0x18   :  { %376 = vmatpush.bf16.msra.mxu3 %v596_v11  ;;  %v421_v32 = vld [vmem:[#allocation3] sm:$0xf]  ;;  %v563_v34 = vld [vmem:[#allocation3 + $0x4] sm:$0xf]  ;;  %v429_v36 = vld [vmem:[#allocation3 + $0x8] sm:$0xf] }
  0x19   :  { %335 = vmatpush.bf16.msra.mxu0 %v571_v12  ;;  %v564_v38 = vld [vmem:[#allocation3 + $0xc] sm:$0xf]  ;;  %v431_v39 = vld [vmem:[#allocation3 + $0x18] sm:$0xf0]  ;;  %v422_v40 = vor.u32 %v565_v33, %v421_v32  ;;  %v426_v41 = vor.u32 %v563_v34, %v423_v35  ;;  %v430_v42 = vor.u32 %v566_v37, %v429_v36 }
  0x1a   :  { %349 = vmatpush.bf16.msra.mxu1 %v579_v13  ;;  %v434_v43 = vor.u32 %v564_v38, %v431_v39 }
  0x1b   :  { %363 = vmatpush.bf16.msra.mxu2 %v587_v14 }
  0x1c   :  { %377 = vmatpush.bf16.msra.mxu3 %v595_v15 }
  0x1d   :  { %336 = vmatpush.bf16.msra.mxu0 %v570_v16 }
  0x1e   :  { %350 = vmatpush.bf16.msra.mxu1 %v578_v17 }
  0x1f   :  { %364 = vmatpush.bf16.msra.mxu2 %v586_v18 }
  0x20   :  { %378 = vmatpush.bf16.msra.mxu3 %v594_v19 }
  0x21   :  { %337 = vmatpush.bf16.msra.mxu0 %v569_v20 }
  0x22   :  { %351 = vmatpush.bf16.msra.mxu1 %v577_v21 }
  0x23   :  { %365 = vmatpush.bf16.msra.mxu2 %v585_v22 }
  0x24   :  { %379 = vmatpush.bf16.msra.mxu3 %v593_v23 }
  0x25   :  { %338 = vmatpush.bf16.msra.mxu0 %v568_v24 }
  0x26   :  { %352 = vmatpush.bf16.msra.mxu1 %v576_v25 }
  0x27   :  { %366 = vmatpush.bf16.msra.mxu2 %v584_v26 }
  0x28   :  { %380 = vmatpush.bf16.msra.mxu3 %v592_v27 }
  0x29   :  { %339 = vmatpush.bf16.msra.mxu0 %v567_v28 }
  0x2a   :  { %353 = vmatpush.bf16.msra.mxu1 %v575_v29 }
  0x2b   :  { %367 = vmatpush.bf16.msra.mxu2 %v583_v30 }
  0x2c   :  { %381 = vmatpush.bf16.msra.mxu3 %v591_v31  ;;  %340 = vmatmul.bf16.vlgmr.msra.gmra.mxu0 %v422_v40 }
  0x2d   :  { %354 = vmatmul.bf16.vlgmr.msra.gmra.mxu1 %v426_v41 }
  0x2e   :  { %368 = vmatmul.bf16.vlgmr.msra.gmra.mxu2 %v430_v42 }
  0x2f   :  { %382 = vmatmul.bf16.vlgmr.msra.gmra.mxu3 %v434_v43 }
  0xa9   :  { %v341_v44 = vpop.f32.mrf.mxu0 }
  0xaa   :  { %v355_v45 = vpop.f32.mrf.mxu1 }
  0xab   :  { %v356_v46 = vadd.f32 %v355_v45, %v341_v44 }
  0xb1   :  { %v369_v47 = vpop.f32.mrf.mxu2  ;;  %v343_v51 = vpop.f32.mrf.mxu0 }
  0xb2   :  { %v383_v48 = vpop.f32.mrf.mxu3  ;;  %v370_v49 = vadd.f32 %v369_v47, %v356_v46  ;;  %v357_v52 = vpop.f32.mrf.mxu1 }
  0xb3   :  { %v358_v53 = vadd.f32 %v357_v52, %v343_v51 }
  0xb4   :  { %v384_v50 = vadd.f32 %v383_v48, %v370_v49 }
  0xb6   :  { %397 = vst [vmem:[#allocation8] sm:$0xff] %v384_v50 }
  0xb9   :  { %v371_v54 = vpop.f32.mrf.mxu2 }
  0xba   :  { %v372_v55 = vadd.f32 %v371_v54, %v358_v53  ;;  %v385_v56 = vpop.f32.mrf.mxu3 }
  0xbc   :  { %v386_v57 = vadd.f32 %v385_v56, %v372_v55 }
  0xbe   :  { %398 = vst [vmem:[#allocation8 + $0x8] sm:$0xff] %v386_v57 }
  0xbf   :  { %411 = dma.vmem_to_hbm [thread:$0]  %s404_s1, 256, %s406_s25, [#allocation5], %s693_s26, %s693_s26, %s694_s27  }
  0xc0   :  { %684 = dma.done.wait [#allocation5], 256  }
  0xc1   :  { %685 = vsyncadd [#allocation5], 4294967040 }
  0xc2   :  { %416 = vsyncpa [#allocation4], 1 }
  0xc3   :  { %417 = vsyncpa [#allocation7], 1 }
  0xc4   :  { %418 = vsyncpa [#allocation5], 1 }

</bundles_post_ra>
